<compile_context>
chip_gen: v6e
topology: v6e:2x2x1
jax: 0.10.0
libtpu: 0.0.40
codegen_flags: <defaults>
</compile_context>

<pallas_src>
import functools

import jax
import jax.numpy as jnp
from jax.experimental import pallas as pl
from jax.experimental.pallas import tpu as pltpu


def _round_up(x, m):
    return ((x + m - 1) // m) * m


def chebykan_kernel(x_ref, w_ref, b_ref, o_ref, *, degree, dot_dtype):
    # x_ref: (tm, input_dim)               current row tile
    # w_ref: (degree*input_dim, O_pad)     fused coeffs for T_1..T_degree (resident)
    # b_ref: (1, O_pad)                    T_0 contribution (per-output bias)
    # o_ref: (tm, O_pad)                   lane-dense output tile
    x = x_ref[...].astype(jnp.float32)
    t = jnp.tanh(x)  # in [-1, 1]; the only transcendental left in the kernel

    # Chebyshev recurrence on the VPU: T_1 = t, T_d = 2*t*T_{d-1} - T_{d-2}.
    feats = [t]
    t_prev, t_cur = jnp.ones_like(t), t
    for _ in range(degree - 1):
        t_next = 2.0 * t * t_cur - t_prev
        feats.append(t_next)
        t_prev, t_cur = t_cur, t_next

    # One lane-concatenated feature slab -> single MXU dot, K = degree*input_dim.
    slab = feats[0] if degree == 1 else jnp.concatenate(feats, axis=-1)
    acc = jnp.dot(
        slab.astype(dot_dtype), w_ref[...], preferred_element_type=jnp.float32
    )
    o_ref[...] = (acc + b_ref[...]).astype(o_ref.dtype)


def cheby_kan_layer(x, cheby_coeffs, *, block_m=1024, use_bf16_matmul=False):
    """ChebyKANLayer forward (inference).

    x: (..., input_dim); cheby_coeffs: (input_dim, output_dim, degree+1).
    Returns (-1, output_dim), matching the PyTorch module's y.view(-1, outdim).
    """
    input_dim, output_dim, deg_p1 = cheby_coeffs.shape
    degree = deg_p1 - 1

    x2 = x.reshape(-1, input_dim)
    m = x2.shape[0]

    # T_0 == 1 for every element -> its contribution is a constant per-output bias.
    bias = jnp.sum(cheby_coeffs[:, :, 0], axis=0).astype(jnp.float32)  # (O,)

    if degree == 0:
        # Degenerate layer: output is just the bias broadcast over rows.
        return jnp.broadcast_to(bias[None, :], (m, output_dim)).astype(x.dtype)

    # Lane-dense output: pad output_dim to a multiple of 128, slice after.
    o_pad = _round_up(output_dim, 128)
    bias_p = jnp.pad(bias, (0, o_pad - output_dim)).reshape(1, o_pad)

    # Row tile: multiple of 8 sublanes; force >= 2 grid steps when m allows so
    # dimension_semantics=("parallel",) actually feeds both v7x TensorCores.
    tm = _round_up(block_m, 8)
    if m > 8:
        tm = min(tm, _round_up(pl.cdiv(m, 2), 8))
    tm = min(tm, _round_up(m, 8))
    m_pad = _round_up(m, tm)

    x_p = jnp.pad(x2, ((0, m_pad - m), (0, 0)))

    # Fuse the degree axis into the contraction:
    # (I, O, D+1)[:, :, 1:] -> (D, I, O) -> (D*I, O_pad),
    # matching the [T_1 | T_2 | ... | T_D] layout of the in-kernel feature slab.
    dot_dtype = jnp.bfloat16 if use_bf16_matmul else jnp.float32
    w2d = jnp.transpose(cheby_coeffs[:, :, 1:], (2, 0, 1)).reshape(
        degree * input_dim, output_dim
    )
    w2d = jnp.pad(w2d, ((0, 0), (0, o_pad - output_dim))).astype(dot_dtype)

    out = pl.pallas_call(
        functools.partial(chebykan_kernel, degree=degree, dot_dtype=dot_dtype),
        out_shape=jax.ShapeDtypeStruct((m_pad, o_pad), x.dtype),
        grid_spec=pl.GridSpec(
            grid=(m_pad // tm,),
            in_specs=[
                pl.BlockSpec((tm, input_dim), lambda i: (i, 0)),
                # Weight & bias blocks never change across the row grid:
                # single-buffer them so the resident footprint stays 1x.
                pl.BlockSpec(
                    (degree * input_dim, o_pad),
                    lambda i: (0, 0),
                    pipeline_mode=pl.Buffered(1),
                ),
                pl.BlockSpec(
                    (1, o_pad),
                    lambda i: (0, 0),
                    pipeline_mode=pl.Buffered(1),
                ),
            ],
            out_specs=pl.BlockSpec((tm, o_pad), lambda i: (i, 0)),
        ),
        compiler_params=pltpu.CompilerParams(
            dimension_semantics=("parallel",),
        ),
    )(x_p, w2d, bias_p)

    # TODO(synk): training-mode Bernoulli dropout over input dims (p=0.1) is omitted;
    # this implements the eval/inference forward where dropout is the identity.
    return out[:m, :output_dim]


if __name__ == "__main__":
    # Small shapes consistent with the module: input_dim=32, output_dim=16, degree=3;
    # x has leading dims (2, 4) which the module flattens to batch = 8.
    input_dim, output_dim, degree = 32, 16, 3
    B, G = 2, 4

    key = jax.random.PRNGKey(0)
    kx, kc = jax.random.split(key)
    x = jax.random.normal(kx, (B, G, input_dim), dtype=jnp.float32)
    std = 1.0 / (input_dim * (degree + 1))
    cheby_coeffs = std * jax.random.normal(
        kc, (input_dim, output_dim, degree + 1), dtype=jnp.float32
    )

    y = cheby_kan_layer(x, cheby_coeffs)
    y = jax.block_until_ready(y)

    # Pure-JAX reference (same math as the PyTorch forward, eval mode).
    t = jnp.tanh(x.reshape(-1, input_dim))
    theta = jnp.arccos(jnp.clip(t, -1.0, 1.0))
    feats = jnp.cos(theta[..., None] * jnp.arange(degree + 1, dtype=jnp.float32))
    ref = jnp.einsum("bid,iod->bo", feats, cheby_coeffs)

    assert y.shape == (B * G, output_dim)
    assert jnp.allclose(y, ref, atol=1e-4, rtol=1e-4), float(jnp.max(jnp.abs(y - ref)))
    print("KERNEL_OK")
</pallas_src>

<mosaic_0001>
module attributes {stable_mosaic.version = 11 : i64} {
  func.func @chebykan_kernel(%arg0: i32, %arg1: memref<8x32xf32, #tpu.memory_space<vmem>>, %arg2: memref<96x128xf32, #tpu.memory_space<vmem>>, %arg3: memref<1x128xf32, #tpu.memory_space<vmem>>, %arg4: memref<8x128xf32, #tpu.memory_space<vmem>>) attributes {dimension_semantics = [#tpu.dimension_semantics<parallel>], iteration_bounds = array<i64: 1>, scalar_prefetch = 0 : i64, scratch_operands = 0 : i64, tpu.core_type = #tpu.core_type<tc>, window_params = [{transform_indices = @transform_0, window_bounds = array<i64: 8, 32>}, {pipeline_mode = #tpu.pipeline_mode<synchronous>, transform_indices = @transform_1, window_bounds = array<i64: 96, 128>}, {pipeline_mode = #tpu.pipeline_mode<synchronous>, transform_indices = @transform_2, window_bounds = array<i64: 1, 128>}, {transform_indices = @transform_3, window_bounds = array<i64: 8, 128>}]} {
    %c0 = arith.constant 0 : index
    %c0_0 = arith.constant 0 : index
    %0 = vector.load %arg1[%c0, %c0_0] : memref<8x32xf32, #tpu.memory_space<vmem>>, vector<8x32xf32>
    %1 = math.tanh %0 : vector<8x32xf32>
    %cst = arith.constant 1.000000e+00 : f32
    %2 = vector.broadcast %cst : f32 to vector<8x32xf32>
    %cst_1 = arith.constant 2.000000e+00 : f32
    %3 = vector.broadcast %cst_1 : f32 to vector<8x32xf32>
    %4 = arith.mulf %3, %1 : vector<8x32xf32>
    %5 = arith.mulf %4, %1 : vector<8x32xf32>
    %6 = arith.subf %5, %2 : vector<8x32xf32>
    %cst_2 = arith.constant 2.000000e+00 : f32
    %7 = vector.broadcast %cst_2 : f32 to vector<8x32xf32>
    %8 = arith.mulf %7, %1 : vector<8x32xf32>
    %9 = arith.mulf %8, %6 : vector<8x32xf32>
    %10 = arith.subf %9, %1 : vector<8x32xf32>
    %11 = tpu.concatenate %1, %6, %10 in 1 : vector<8x32xf32>, vector<8x32xf32>, vector<8x32xf32> -> vector<8x96xf32>
    %c0_3 = arith.constant 0 : index
    %c0_4 = arith.constant 0 : index
    %12 = vector.load %arg2[%c0_3, %c0_4] : memref<96x128xf32, #tpu.memory_space<vmem>>, vector<96x128xf32>
    %cst_5 = arith.constant dense<0.000000e+00> : vector<8x128xf32>
    %13 = tpu.matmul %11, %12, %cst_5 {dimension_numbers = #tpu.dot_dimension_numbers<[1], [0], [0], [1], [0, 0, 1, 1], [], []>} : vector<8x96xf32>, vector<96x128xf32>, vector<8x128xf32> -> vector<8x128xf32>
    %c0_6 = arith.constant 0 : index
    %c0_7 = arith.constant 0 : index
    %14 = vector.load %arg3[%c0_6, %c0_7] : memref<1x128xf32, #tpu.memory_space<vmem>>, vector<1x128xf32>
    %15 = vector.broadcast %14 : vector<1x128xf32> to vector<8x128xf32>
    %16 = arith.addf %13, %15 : vector<8x128xf32>
    %c0_8 = arith.constant 0 : index
    %c0_9 = arith.constant 0 : index
    %17 = vector.load %arg4[%c0_8, %c0_9] : memref<8x128xf32, #tpu.memory_space<vmem>>, vector<8x128xf32>
    tpu.vector_store %arg4[%c0_8, %c0_9], %16 {strides = array<i32>} : memref<8x128xf32, #tpu.memory_space<vmem>>, vector<8x128xf32>,
    return
  }
  func.func @transform_0(%arg0: i32) -> (i32, i32) {
    %c0_i32 = arith.constant 0 : i32
    %c0_i32_0 = arith.constant 0 : i32
    return %arg0, %c0_i32 : i32, i32
  }
  func.func @transform_1(%arg0: i32) -> (i32, i32) {
    %c0_i32 = arith.constant 0 : i32
    %c0_i32_0 = arith.constant 0 : i32
    %c0_i32_1 = arith.constant 0 : i32
    return %c0_i32, %c0_i32_0 : i32, i32
  }
  func.func @transform_2(%arg0: i32) -> (i32, i32) {
    %c0_i32 = arith.constant 0 : i32
    %c0_i32_0 = arith.constant 0 : i32
    %c0_i32_1 = arith.constant 0 : i32
    return %c0_i32, %c0_i32_0 : i32, i32
  }
  func.func @transform_3(%arg0: i32) -> (i32, i32) {
    %c0_i32 = arith.constant 0 : i32
    %c0_i32_0 = arith.constant 0 : i32
    return %arg0, %c0_i32 : i32, i32
  }
}

</mosaic_0001>

<bundles_post_ra>
// kernel: tpu_custom_call.1
= control target key start
LH: loop header
LB: loop body
LE: loop exit
PB: predicated region body
PF: predicated region fallthrough
CT: control target
= control target key end

     0   :  { %8 = vsyncpa [#allocation3], 0  ;;  %s331_s0 = inlined_call_operand.hbm [shape: f32[8,32], index: 0, kind: input, shape index: {}]   ;;  %s332_s1 = inlined_call_operand.hbm [shape: f32[96,128], index: 1, kind: input, shape index: {}]   ;;  %s333_s2 = inlined_call_operand.vmem [shape: f32[1,128], index: 2, kind: input, shape index: {}]   ;;  %s334_s3 = inlined_call_operand.hbm [shape: f32[8,128], index: 3, kind: output, shape index: {}]  }
   0x1   :  { %9 = vsyncpa [#allocation6], 0 }
   0x2   :  { %10 = vsyncpa [#allocation4], 0  ;;  %s290_s12 = smov [#allocation2]   ;;  %s291_s14 = smov [#allocation5]  }
   0x3   :  { %s17_s13 = sshll.u32 %s290_s12, 4  ;;  %s26_s15 = sshll.u32 %s291_s14, 4  ;;  %s18_s13 = int_to_ptr.vmem [resolvable:$true] %s17_s13  ;;  %s27_s15 = int_to_ptr.vmem [resolvable:$true] %s26_s15 }
   0x4   :  { %s232_s16 = scalar_lea.vmem %s18_s13, 128  ;;  %p237_p1 = scmp.lt.s32.totalorder %s18_s13, %s18_s13 }
   0x5   :  { %p233_p0 = scmp.ne.s32.totalorder %s18_s13, %s232_s16  ;;  %p238_p2 = scmp.lt.s32.totalorder %s232_s16, %s232_s16 }
   0x7   :  { %p239_p3 = por %p238_p2, %p237_p1 }
   0x9   :  { %p240_p4 = pnand %p239_p3, %p233_p0 }
   0xb   :  { %243 = shalt.err (!%p240_p4)
}
   0xc   :  { %20 = dma.hbm_to_vmem [thread:$0]  %s331_s0, 128, %s18_s13, [#allocation3]  }
   0xd   :  { %s252_s19 = scalar_lea.vmem %s27_s15, 1536  ;;  %p257_p6 = scmp.lt.s32.totalorder %s27_s15, %s27_s15 }
   0xe   :  { %p253_p5 = scmp.ne.s32.totalorder %s27_s15, %s252_s19  ;;  %p258_p7 = scmp.lt.s32.totalorder %s252_s19, %s252_s19 }
  0x10   :  { %p259_p8 = por %p258_p7, %p257_p6 }
  0x12   :  { %p260_p9 = pnand %p259_p8, %p253_p5 }
  0x14   :  { %263 = shalt.err (!%p260_p9)
}
  0x15   :  { %s292_s20 = smov 128   ;;  %s293_s21 = smov 8  }
  0x16   :  { %32 = dma.hbm_to_vmem [thread:$0]  %s332_s1, 1536, %s27_s15, [#allocation6], %s292_s20, %s292_s20, %s293_s21  }
  0x17   :  { %284 = dma.done.wait [#allocation3], 128  }
  0x18   :  { %285 = vsyncadd [#allocation3], 4294967168 }
  0x19   :  { %286 = dma.done.wait [#allocation6], 1536  }
  0x1a   :  { %287 = vsyncadd [#allocation6], 4294965760  ;;  %v294_v0 = vmov 0.0   ;;  %v41_v1 = vld [vmem:[#allocation2] sm:$0xff]  ;;  %v70_v3 = vld [vmem:[#allocation5 + $0x50] sm:$0xff]  ;;  %vm295_vm0 = vmmov 0  }
  0x1b   :  { %186 = vmatprep.subr.mxu0 %v294_v0  ;;  %v71_v2 = vld [vmem:[#allocation5 + $0x58] sm:$0xff]  ;;  %222 = vtanh.f32 %v41_v1  ;;  %v69_v4 = vld [vmem:[#allocation5 + $0x48] sm:$0xff]  ;;  %v68_v5 = vld [vmem:[#allocation5 + $0x40] sm:$0xff]  ;;  %210 = vmatprep.mubr.msk.f32.mxu0 %vm295_vm0, %v294_v0  ;;  %s296_s0 = smov 32   ;;  %s297_s1 = smov 64   ;;  %vm56_vm1 = vcmask 261120  }
  0x1c   :  { %187 = vmatpush3.msra.mxu0 %v71_v2  ;;  %v67_v6 = vld [vmem:[#allocation5 + $0x38] sm:$0xff]  ;;  %v66_v7 = vld [vmem:[#allocation5 + $0x30] sm:$0xff]  ;;  %v65_v8 = vld [vmem:[#allocation5 + $0x28] sm:$0xff]  ;;  %vm58_vm2 = vcmask 523264   ;;  %vm79_vm3 = vcmask 785408   ;;  %s298_s26 = smov [#allocation7]  }
  0x1d   :  { %188 = vmatprep.subr.mxu0 %v294_v0  ;;  %v64_v9 = vld [vmem:[#allocation5 + $0x20] sm:$0xff]  ;;  %v63_v11 = vld [vmem:[#allocation5 + $0x18] sm:$0xff]  ;;  %v62_v13 = vld [vmem:[#allocation5 + $0x10] sm:$0xff]  ;;  %s160_s27 = sshll.u32 %s298_s26, 4  ;;  %s161_s27 = int_to_ptr.vmem [resolvable:$true] %s160_s27 }
  0x1e   :  { %189 = vmatpush3.msra.mxu0 %v70_v3  ;;  %v61_v15 = vld [vmem:[#allocation5 + $0x8] sm:$0xff]  ;;  %v60_v17 = vld [vmem:[#allocation5] sm:$0xff]  ;;  %v171_v24 = vld [vmem:[%s333_s2] ss:$0 sm:$0xff]  ;;  %s264_s28 = scalar_lea.vmem %s161_s27, 128  ;;  %p269_p11 = scmp.lt.s32.totalorder %s161_s27, %s161_s27 }
  0x1f   :  { %190 = vmatprep.subr.mxu0 %v294_v0  ;;  %p265_p10 = scmp.ne.s32.totalorder %s161_s27, %s264_s28  ;;  %p270_p12 = scmp.lt.s32.totalorder %s264_s28, %s264_s28 }
  0x20   :  { %191 = vmatpush3.msra.mxu0 %v69_v4 }
  0x21   :  { %192 = vmatprep.subr.mxu0 %v294_v0  ;;  %p271_p13 = por %p270_p12, %p269_p11 }
  0x22   :  { %193 = vmatpush3.msra.mxu0 %v68_v5 }
  0x23   :  { %194 = vmatprep.subr.mxu0 %v294_v0  ;;  %p272_p0 = pnand %p271_p13, %p265_p10 }
  0x24   :  { %195 = vmatpush3.msra.mxu0 %v67_v6 }
  0x25   :  { %196 = vmatprep.subr.mxu0 %v294_v0 }
  0x26   :  { %197 = vmatpush3.msra.mxu0 %v66_v7 }
  0x27   :  { %198 = vmatprep.subr.mxu0 %v294_v0 }
  0x28   :  { %199 = vmatpush3.msra.mxu0 %v65_v8  ;;  %v223_v10 = vpop.eup %222 }
  0x29   :  { %200 = vmatprep.subr.mxu0 %v294_v0  ;;  %v43_v12 = vmul.f32 2.0, %v223_v10 }
  0x2a   :  { %201 = vmatpush3.msra.mxu0 %v64_v9 }
  0x2b   :  { %202 = vmatprep.subr.mxu0 %v294_v0  ;;  %v44_v14 = vmul.f32 %v223_v10, %v43_v12 }
  0x2c   :  { %203 = vmatpush3.msra.mxu0 %v63_v11 }
  0x2d   :  { %204 = vmatprep.subr.mxu0 %v294_v0  ;;  %v170_v16 = vadd.f32 -1.0, %v44_v14 }
  0x2e   :  { %205 = vmatpush3.msra.mxu0 %v62_v13 }
  0x2f   :  { %206 = vmatprep.subr.mxu0 %v294_v0  ;;  %49 = vrot.lane.b32.xlu0 %v170_v16, %s296_s0  ;;  %v46_v18 = vmul.f32 %v170_v16, %v43_v12 }
  0x30   :  { %207 = vmatpush3.msra.mxu0 %v61_v15 }
  0x31   :  { %208 = vmatprep.subr.mxu0 %v294_v0  ;;  %v47_v19 = vsub.f32 %v46_v18, %v223_v10 }
  0x32   :  { %209 = vmatpush3.msra.mxu0 %v60_v17 }
  0x33   :  { %53 = vrot.lane.b32.xlu0 %v47_v19, %s297_s1 }
  0xa1   :  { %v50_v20 = vpop.permute.xlu0 %49 }
  0xa2   :  { %v57_v21 = vsel %vm56_vm1, %v223_v10, %v50_v20 }
  0xa5   :  { %v54_v22 = vpop.permute.xlu0 %53 }
  0xa6   :  { %v59_v23 = vsel %vm58_vm2, %v57_v21, %v54_v22 }
  0xa7   :  { %211 = vmatmul.mubr.msk.f32.vlgmr.msra.gmra.mxu0 %vm79_vm3, %v59_v23 }
 0x167   :  { %v149_v25 = vpop.f32.mrf.mxu0 }
 0x168   :  { %v150_v26 = vadd.f32 %v171_v24, %v149_v25 }
 0x169   :  { %v212_v27 = vpop.f32.mrf.mxu0 }
 0x16a   :  { %153 = vst [vmem:[#allocation7] sm:$0xff] %v150_v26 }
 0x16b   :  { %275 = shalt.err (!%p272_p0)
}
 0x16c   :  { %163 = dma.vmem_to_hbm [thread:$0]  %s161_s27, 128, %s334_s3, [#allocation4]  }
 0x16d   :  { %288 = dma.done.wait [#allocation4], 128  }
 0x16e   :  { %289 = vsyncadd [#allocation4], 4294967168 }
 0x16f   :  { %167 = vsyncpa [#allocation3], 1 }
 0x170   :  { %168 = vsyncpa [#allocation6], 1 }
 0x171   :  { %169 = vsyncpa [#allocation4], 1 }

</bundles_post_ra>
